<compile_context>
chip_gen: v7x
topology: tpu7x:2x2x1
jax: 0.10.0
libtpu: 0.0.40
codegen_flags: <defaults>
</compile_context>

<pallas_src>
import math

import jax
import jax.numpy as jnp
from jax.experimental import pallas as pl
from jax.experimental.pallas import tpu as pltpu


# ---------------------------------------------------------------------------
# Kernel
# ---------------------------------------------------------------------------
def _pe_add_kernel(x_ref, pos_ref, w_ref, b_ref, o_ref):
    """out = x + (per-row 1x1 conv of the 4 positional channels).

    x_ref  : (rt, hw_t)  rows = flattened (batch, channel), lanes = H*W
    pos_ref: (4, hw_t)   north/south/west/east positional tile (f32)
    w_ref  : (rt, 4)     w_ref[p, k] = conv_weight[k, p % C]   (f32)
    b_ref  : (rt, 1)     b_ref[p, 0] = conv_bias[p % C]        (f32)
    """
    pos = pos_ref[...]
    w = w_ref[...]
    # 4-channel 1x1 conv as broadcast multiply-adds on the VPU (K=4 is far too
    # small to be worth an MXU matmul); hidden under the HBM-bound add.
    pe = b_ref[...]                                   # (rt, 1) -> broadcast
    pe = pe + w[:, 0:1] * pos[0:1, :]
    pe = pe + w[:, 1:2] * pos[1:2, :]
    pe = pe + w[:, 2:3] * pos[2:3, :]
    pe = pe + w[:, 3:4] * pos[3:4, :]
    # f32 accumulate, cast back (exact for f32 inputs; a bf16-native add would
    # also be acceptable for bf16 activations and slightly cheaper on v6e+).
    o_ref[...] = (x_ref[...].astype(jnp.float32) + pe).astype(o_ref.dtype)


# ---------------------------------------------------------------------------
# Tile planning
# ---------------------------------------------------------------------------
def _round_down(x: int, m: int) -> int:
    return (x // m) * m


def _sublane_pack(itemsize: int) -> int:
    return {4: 8, 2: 16, 1: 32}.get(itemsize, 8)


def _vmem_plan():
    """(target bytes per x block, vmem_limit_bytes or None), per generation."""
    kind = ""
    try:
        kind = jax.devices()[0].device_kind.lower()
    except Exception:
        pass
    if "v6" in kind:          # 128 MiB physical / 32 MiB scoped default
        return 6 << 20, 96 << 20
    if "v5" in kind:          # v5e: 16 MiB scoped default -> stay conservative
        return 2 << 20, None
    # v7x (64 MiB physical / 32 MiB scoped default) and unknown backends.
    return 3 << 20, None


def _plan_tiles(rows: int, hw: int, c: int, itemsize: int, target_bytes: int):
    """Pick (rt, hw_t).

    rt is always a multiple of C (so the per-row weight replication is
    grid-invariant) and either a multiple of the sublane pack or the full row
    extent (both legal block shapes).  hw_t is a multiple of 128 (or the full
    HW when HW < 128); ragged edges are handled by the cdiv grid + masking.
    """
    sub = _sublane_pack(itemsize)
    base = math.lcm(c, sub)

    if base >= rows:
        rt = rows                                    # one block covers all rows
    else:
        rt = base

    # Lane tile: as wide as the byte budget allows (lane-dense stores are the
    # single biggest lever), multiple of 128, never wider than HW.
    if hw <= 128:
        hw_t = hw
    else:
        cap = max(128, _round_down(target_bytes // (rt * itemsize), 128))
        hw_t = max(128, min(_round_down(hw, 128), cap))

    # Spend leftover budget on more rows per block (amortizes per-step cost).
    if rt < rows:
        cap_rows = _round_down(target_bytes // (hw_t * itemsize), base)
        rt = max(base, min(_round_down(rows, base), cap_rows))

    # Guarantee >= 2 grid blocks when possible (v7x has 2 TensorCores; a
    # (1, 1) grid would leave one idle).
    n_hw = -(-hw // hw_t)
    n_rows = -(-rows // rt)
    if n_hw * n_rows == 1:
        if hw_t >= 256:
            hw_t = max(128, _round_down(hw_t // 2, 128))
        elif base < rows and rt >= 2 * base:
            rt = max(base, _round_down(rt // 2, base))
    return rt, hw_t


# ---------------------------------------------------------------------------
# Parameter / buffer construction (matches the PyTorch module)
# ---------------------------------------------------------------------------
def make_linear_position_embedding(obs_size: int) -> jnp.ndarray:
    """Replicates the torch buffer construction. Returns (4, H, W) float32."""
    height = width = obs_size
    east = jnp.tile(jnp.linspace(0.0, 1.0, width), height).reshape(height, width)
    west = jnp.tile(jnp.linspace(1.0, 0.0, width), height).reshape(height, width)
    south = jnp.tile(jnp.linspace(0.0, 1.0, height), width).reshape(width, height).T
    north = jnp.tile(jnp.linspace(1.0, 0.0, height), width).reshape(width, height).T
    return jnp.stack([north, south, west, east], axis=0).astype(jnp.float32)


def init_channels_map_params(key, obs_channels: int):
    """Deterministic init matching Conv2d(4, C, 1) shapes.

    NOTE: the PyTorch conv weight has shape (C, 4, 1, 1); we store its
    transpose (4, C).  When loading real checkpoints: w = torch_w[:, :, 0, 0].T
    """
    k_w, k_b = jax.random.split(key)
    fan_in = 4  # in_channels * kH * kW
    bound = 1.0 / math.sqrt(fan_in)
    w = jax.random.uniform(k_w, (4, obs_channels), jnp.float32, -bound, bound)
    b = jax.random.uniform(k_b, (1, obs_channels), jnp.float32, -bound, bound)
    return w, b


# ---------------------------------------------------------------------------
# Pure-JAX reference (1x1 conv == einsum over the 4 positional channels)
# ---------------------------------------------------------------------------
def _reference(x_nchw, pos_4hw, weight_kc, bias_1c):
    pe = jnp.einsum("khw,kc->chw", pos_4hw, weight_kc) + bias_1c[0][:, None, None]
    return (x_nchw.astype(jnp.float32) + pe[None]).astype(x_nchw.dtype)


# ---------------------------------------------------------------------------
# Forward: x (B, C, H, W) -> (B, C, H, W)
# ---------------------------------------------------------------------------
def positional_embedding_forward(x_nchw, pos_4hw, weight_kc, bias_1c, *,
                                 use_pallas=None,
                                 target_block_bytes=None,
                                 vmem_limit_bytes=None,
                                 donate_x=False):
    B, C, H, W = x_nchw.shape
    HW = H * W
    rows = B * C
    itemsize = jnp.dtype(x_nchw.dtype).itemsize

    if use_pallas is None:
        # Below a few hundred KiB the fixed pallas_call launch/pipeline cost
        # dominates; a fused XLA broadcast-add is strictly faster there.
        use_pallas = rows * HW * itemsize >= (256 << 10)
    if not use_pallas:
        return _reference(x_nchw, pos_4hw, weight_kc, bias_1c)

    auto_target, auto_vmem = _vmem_plan()
    target = int(target_block_bytes or auto_target)
    vmem_limit = vmem_limit_bytes if vmem_limit_bytes is not None else auto_vmem

    # Free reshapes (row-major NCHW): (B, C, H, W) -> (B*C, HW), (4, H, W) -> (4, HW).
    x_rows = x_nchw.reshape(rows, HW)
    pos_flat = pos_4hw.reshape(4, HW).astype(jnp.float32)

    rt, hw_t = _plan_tiles(rows, HW, C, itemsize, target)

    # Per-row conv parameters: row p of any row block maps to channel p % C
    # because rt is a multiple of C, so this tiny replication is grid-invariant.
    reps = rt // C
    w_rows = jnp.tile(weight_kc.T.astype(jnp.float32), (reps, 1))          # (rt, 4)
    b_rows = jnp.tile(bias_1c.reshape(C, 1).astype(jnp.float32), (reps, 1))  # (rt, 1)

    # Rows innermost -> the pos/w/b block indices are unchanged between
    # consecutive steps, so Pallas skips their re-fetch.
    grid = (pl.cdiv(HW, hw_t), pl.cdiv(rows, rt))

    cp_kwargs = {"dimension_semantics": ("parallel", "parallel")}
    if vmem_limit is not None:
        cp_kwargs["vmem_limit_bytes"] = int(vmem_limit)

    extra = {}
    if donate_x:
        # Write the add in place (x must be donated at the jit boundary).
        extra["input_output_aliases"] = {0: 0}

    out_rows = pl.pallas_call(
        _pe_add_kernel,
        out_shape=jax.ShapeDtypeStruct((rows, HW), x_rows.dtype),
        grid_spec=pltpu.PrefetchScalarGridSpec(
            num_scalar_prefetch=0,
            grid=grid,
            in_specs=[
                pl.BlockSpec((rt, hw_t), lambda h, r: (r, h)),   # x rows
                pl.BlockSpec((4, hw_t), lambda h, r: (0, h)),    # pos (hoisted over rows)
                pl.BlockSpec((rt, 4), lambda h, r: (0, 0)),      # per-row weights (resident)
                pl.BlockSpec((rt, 1), lambda h, r: (0, 0)),      # per-row bias   (resident)
            ],
            out_specs=pl.BlockSpec((rt, hw_t), lambda h, r: (r, h)),
        ),
        compiler_params=pltpu.CompilerParams(**cp_kwargs),
        **extra,
    )(x_rows, pos_flat, w_rows, b_rows)

    return out_rows.reshape(B, C, H, W)


if __name__ == "__main__":
    obs_size = 16
    obs_channels = 4
    batch = 2

    key = jax.random.PRNGKey(0)
    k_x, k_p = jax.random.split(key)

    x = jax.random.normal(k_x, (batch, obs_channels, obs_size, obs_size), jnp.float32)
    pos = make_linear_position_embedding(obs_size)
    weight, bias = init_channels_map_params(k_p, obs_channels)

    # Force the Pallas path (the auto heuristic would bypass it at demo size).
    out = positional_embedding_forward(x, pos, weight, bias, use_pallas=True)
    out = jax.block_until_ready(out)

    ref = _reference(x, pos, weight, bias)
    assert out.shape == x.shape and out.dtype == x.dtype
    assert jnp.allclose(out, ref, atol=1e-5, rtol=1e-5)

    print("KERNEL_OK")
</pallas_src>

<mosaic_0001>
module attributes {stable_mosaic.version = 11 : i64} {
  func.func @_pe_add_kernel(%arg0: i32, %arg1: i32, %arg2: memref<8x128xf32, #tpu.memory_space<vmem>>, %arg3: memref<4x128xf32, #tpu.memory_space<vmem>>, %arg4: memref<8x4xf32, #tpu.memory_space<vmem>>, %arg5: memref<8x1xf32, #tpu.memory_space<vmem>>, %arg6: memref<8x128xf32, #tpu.memory_space<vmem>>) attributes {dimension_semantics = [#tpu.dimension_semantics<parallel>, #tpu.dimension_semantics<parallel>], iteration_bounds = array<i64: 2, 1>, scalar_prefetch = 0 : i64, scratch_operands = 0 : i64, tpu.core_type = #tpu.core_type<tc>, window_params = [{transform_indices = @transform_0, window_bounds = array<i64: 8, 128>}, {transform_indices = @transform_1, window_bounds = array<i64: 4, 128>}, {pipeline_mode = #tpu.pipeline_mode<synchronous>, transform_indices = @transform_2, window_bounds = array<i64: 8, 4>}, {pipeline_mode = #tpu.pipeline_mode<synchronous>, transform_indices = @transform_3, window_bounds = array<i64: 8, 1>}, {transform_indices = @transform_4, window_bounds = array<i64: 8, 128>}]} {
    %c0 = arith.constant 0 : index
    %c0_0 = arith.constant 0 : index
    %0 = vector.load %arg3[%c0, %c0_0] : memref<4x128xf32, #tpu.memory_space<vmem>>, vector<4x128xf32>
    %c0_1 = arith.constant 0 : index
    %c0_2 = arith.constant 0 : index
    %1 = vector.load %arg4[%c0_1, %c0_2] : memref<8x4xf32, #tpu.memory_space<vmem>>, vector<8x4xf32>
    %c0_3 = arith.constant 0 : index
    %c0_4 = arith.constant 0 : index
    %2 = vector.load %arg5[%c0_3, %c0_4] : memref<8x1xf32, #tpu.memory_space<vmem>>, vector<8x1xf32>
    %3 = vector.extract_strided_slice %1 {offsets = [0, 0], sizes = [8, 1], strides = [1, 1]} : vector<8x4xf32> to vector<8x1xf32>
    %4 = vector.extract_strided_slice %0 {offsets = [0, 0], sizes = [1, 128], strides = [1, 1]} : vector<4x128xf32> to vector<1x128xf32>
    %5 = vector.broadcast %3 : vector<8x1xf32> to vector<8x128xf32>
    %6 = vector.broadcast %4 : vector<1x128xf32> to vector<8x128xf32>
    %7 = arith.mulf %5, %6 : vector<8x128xf32>
    %8 = vector.broadcast %2 : vector<8x1xf32> to vector<8x128xf32>
    %9 = arith.addf %8, %7 : vector<8x128xf32>
    %10 = vector.extract_strided_slice %1 {offsets = [0, 1], sizes = [8, 1], strides = [1, 1]} : vector<8x4xf32> to vector<8x1xf32>
    %11 = vector.extract_strided_slice %0 {offsets = [1, 0], sizes = [1, 128], strides = [1, 1]} : vector<4x128xf32> to vector<1x128xf32>
    %12 = vector.broadcast %10 : vector<8x1xf32> to vector<8x128xf32>
    %13 = vector.broadcast %11 : vector<1x128xf32> to vector<8x128xf32>
    %14 = arith.mulf %12, %13 : vector<8x128xf32>
    %15 = arith.addf %9, %14 : vector<8x128xf32>
    %16 = vector.extract_strided_slice %1 {offsets = [0, 2], sizes = [8, 1], strides = [1, 1]} : vector<8x4xf32> to vector<8x1xf32>
    %17 = vector.extract_strided_slice %0 {offsets = [2, 0], sizes = [1, 128], strides = [1, 1]} : vector<4x128xf32> to vector<1x128xf32>
    %18 = vector.broadcast %16 : vector<8x1xf32> to vector<8x128xf32>
    %19 = vector.broadcast %17 : vector<1x128xf32> to vector<8x128xf32>
    %20 = arith.mulf %18, %19 : vector<8x128xf32>
    %21 = arith.addf %15, %20 : vector<8x128xf32>
    %22 = vector.extract_strided_slice %1 {offsets = [0, 3], sizes = [8, 1], strides = [1, 1]} : vector<8x4xf32> to vector<8x1xf32>
    %23 = vector.extract_strided_slice %0 {offsets = [3, 0], sizes = [1, 128], strides = [1, 1]} : vector<4x128xf32> to vector<1x128xf32>
    %24 = vector.broadcast %22 : vector<8x1xf32> to vector<8x128xf32>
    %25 = vector.broadcast %23 : vector<1x128xf32> to vector<8x128xf32>
    %26 = arith.mulf %24, %25 : vector<8x128xf32>
    %27 = arith.addf %21, %26 : vector<8x128xf32>
    %c0_5 = arith.constant 0 : index
    %c0_6 = arith.constant 0 : index
    %28 = vector.load %arg2[%c0_5, %c0_6] : memref<8x128xf32, #tpu.memory_space<vmem>>, vector<8x128xf32>
    %29 = arith.addf %28, %27 : vector<8x128xf32>
    %c0_7 = arith.constant 0 : index
    %c0_8 = arith.constant 0 : index
    %30 = vector.load %arg6[%c0_7, %c0_8] : memref<8x128xf32, #tpu.memory_space<vmem>>, vector<8x128xf32>
    tpu.vector_store %arg6[%c0_7, %c0_8], %29 {strides = array<i32>} : memref<8x128xf32, #tpu.memory_space<vmem>>, vector<8x128xf32>,
    return
  }
  func.func @transform_0(%arg0: i32, %arg1: i32) -> (i32, i32) {
    %c0_i32 = arith.constant 0 : i32
    return %arg1, %arg0 : i32, i32
  }
  func.func @transform_1(%arg0: i32, %arg1: i32) -> (i32, i32) {
    %c0_i32 = arith.constant 0 : i32
    %c0_i32_0 = arith.constant 0 : i32
    return %c0_i32, %arg0 : i32, i32
  }
  func.func @transform_2(%arg0: i32, %arg1: i32) -> (i32, i32) {
    %c0_i32 = arith.constant 0 : i32
    %c0_i32_0 = arith.constant 0 : i32
    %c0_i32_1 = arith.constant 0 : i32
    return %c0_i32, %c0_i32_0 : i32, i32
  }
  func.func @transform_3(%arg0: i32, %arg1: i32) -> (i32, i32) {
    %c0_i32 = arith.constant 0 : i32
    %c0_i32_0 = arith.constant 0 : i32
    %c0_i32_1 = arith.constant 0 : i32
    return %c0_i32, %c0_i32_0 : i32, i32
  }
  func.func @transform_4(%arg0: i32, %arg1: i32) -> (i32, i32) {
    %c0_i32 = arith.constant 0 : i32
    return %arg1, %arg0 : i32, i32
  }
}

</mosaic_0001>

<bundles_post_ra>
// kernel: tpu_custom_call.1
= control target key start
LH: loop header
LB: loop body
LE: loop exit
PB: predicated region body
PF: predicated region fallthrough
CT: control target
= control target key end

     0   :  { %9 = vsyncpa [#allocation3], 0  ;;  %s699_s0 = inlined_call_operand.vmem [shape: f32[8,256], index: 0, kind: input, shape index: {}]   ;;  %s700_s1 = inlined_call_operand.vmem [shape: f32[4,256], index: 1, kind: input, shape index: {}]   ;;  %s701_s2 = inlined_call_operand.vmem [shape: f32[8,4], index: 2, kind: input, shape index: {}]   ;;  %s702_s3 = inlined_call_operand.vmem [shape: f32[8,1], index: 3, kind: input, shape index: {}]   ;;  %s703_s4 = inlined_call_operand.hbm [shape: f32[8,256], index: 4, kind: output, shape index: {}]  }
   0x1   :  { %11 = vsyncpa [#allocation3 + $0x1], 0  ;;  %s578_s15 = smov 0   ;;  %s580_s16 = smov 0  }
   0x2   :  { %s582_s17 = smov 0   ;;  %s584_s18 = smov 0  }
   0x3   :  { %s586_s19 = smov 0   ;;  %s588_s20 = smov 0  }
   0x4 LB: > { %s393_s21 = sadd.s32 4294967295, %s546_s20   ;;  %s394_s22 = sadd.s32 4294967294, %s546_s20   ;;  %s546_s20 = sphi %s588_s20, %s17_s20   ;;  %s542_s19 = sphi %s586_s19, %s710_s19   ;;  %s538_s18 = sphi %s584_s18, %s709_s18   ;;  %s534_s17 = sphi %s582_s17, %s708_s17   ;;  %s530_s16 = sphi %s580_s16, %s707_s16   ;;  %s526_s15 = sphi %s578_s15, %s706_s15  }
   0x5   : > { %s29_s23 = sadd.s32 1, %s542_s19  ;;  %s134_s24 = sadd.s32 1, %s534_s17 }
   0x6   : > { %p31_p0 = scmp.ge.s32.totalorder %s29_s23, 2  ;;  %p144_p1 = scmp.ne.s32.totalorder %s534_s17, %s530_s16 }
   0x7   : > { %p145_p2 = scmp.eq.s32.totalorder %s393_s21, 1  ;;  %p150_p3 = scmp.ne.s32.totalorder %s530_s16, %s526_s15 }
   0x8   : > { %s712_s23 = smov (%p31_p0, %s29_s23), 0  ;;  %p151_p5 = scmp.eq.s32.totalorder %s394_s22, 1 }
   0x9   : > { %p618_p4 = por %p145_p2, %p144_p1  ;;  %s130_s26 = ssub.s32 %s542_s19, %s712_s23 }
   0xa   : > { %p397_p6 = scmp.ge.s32.totalorder %s546_s20, 1  ;;  %p132_p7 = scmp.eq.s32.totalorder %s130_s26, 0 }
   0xb   : > { %p625_p8 = por %p151_p5, %p150_p3  ;;  %p193_p9 = scmp.lt.s32.totalorder %s546_s20, 3 }
   0xc   : > { %s631_s28 = scalar_select %p132_p7, %s534_s17, %s134_s24  }
   0xd   : > { %p194_p10 = pnand %p397_p6, %p193_p9 }
   0xe   : > { %v239_v0 = vld [vmem:[%s701_s2] sm:$0xff] (!%p194_p10)  ;;  %v548_v1 = vmov (!%p194_p10), 0   ;;  %v549_v2 = vmov (!%p194_p10), 1   ;;  %v550_v4 = vmov (!%p194_p10), 2   ;;  %v551_v5 = vmov (!%p194_p10), 3   ;;  %p228_p11 = scmp.lt.s32.totalorder (!%p194_p10), %s538_s18, 1 }
   0xf   : > { %197 = sbr.rel (%p194_p10) target bundleno = 173 (0xad), region = 36  ;;  %464 = vset.pattern.permute.xlu0 (!%p194_p10), %v548_v1  ;;  %465 = vset.pattern.permute.xlu1 (!%p194_p10), %v549_v2  ;;  %v240_v3 = vld [vmem:[%s702_s3] sm:$0xff] (!%p194_p10)  ;;  %v246_v6 = vlaneseq (!%p194_p10)  ;;  %s223_s12 = sand.u32 (!%p194_p10), 1, %s530_s16  }
  0x10   : > { %243 = vperm.xlu0 (!%p194_p10), %464, %v239_v0   ;;  %258 = vperm.xlu1 (!%p194_p10), %465, %v239_v0   ;;  %s398_s14 = sshll.u32 (!%p194_p10), %s223_s12, 3  ;;  %s402_s26 = sshll.u32 (!%p194_p10), %s538_s18, 7 }
  0x11   : > { %v247_v7 = vshrl.u32 (!%p194_p10), %v246_v6, 7  ;;  %s225_s29 = scalar_lea.vmem (!%p194_p10), [#allocation2], %s398_s14 }
  0x12   : > { %s306_s30 = sshll.u32 (!%p194_p10), %s225_s29, 4  ;;  %s654_s30 = int_to_ptr.vmem [resolvable:$true] %s306_s30 }
  0x13   : > { %v248_v8 = vsub.s32 (!%p194_p10), 0, %v247_v7  ;;  %v263_v10 = vsub.s32 (!%p194_p10), 1, %v247_v7  ;;  %v273_v11 = vsub.s32 (!%p194_p10), 2, %v247_v7  ;;  %v283_v17 = vsub.s32 (!%p194_p10), 3, %v247_v7  ;;  %s468_s9 = scalar_lea.vmem (!%p194_p10), %s654_s30, 128 }
  0x14   : > { %253 = vperm.xlu0 (!%p194_p10), %464, %v240_v3   ;;  %466 = vset.pattern.permute.xlu1 (!%p194_p10), %v550_v4  ;;  %p469_p12 = scmp.ne.s32.totalorder (!%p194_p10), %s654_s30, %s468_s9 }
  0x15   : > { %268 = vperm.xlu1 (!%p194_p10), %466, %v239_v0  }
  0x16   : > { %s229_s7 = scalar_select %p228_p11, %s538_s18, 1 }
  0x17   : > { %p470_p13 = pnand %p469_p12, %p618_p4  ;;  %s552_s18 = smov [#allocation2]  }
  0x18   : > { %467 = vset.pattern.permute.xlu0 %v551_v5  ;;  %s400_s8 = sshll.u32 %s229_s7, 2  ;;  %s399_s13 = sshll.u32 %s229_s7, 3 }
  0x19   : > { %278 = vperm.xlu0 %467, %v239_v0   ;;  %s237_s11 = scalar_lea.vmem %s700_s1, %s400_s8  ;;  %s233_s24 = scalar_lea.vmem %s699_s0, %s399_s13 }
  0x1a   : > { %v238_v9 = vld [vmem:[%s237_s11] sm:$0xf]  ;;  %s652_s7 = scalar_lea.hbm %s703_s4, %s402_s26  ;;  %s291_s8 = scalar_lea.sflag [#allocation3], %s223_s12 }
  0x1b   : > { %v249_v12 = vrot.slane %v238_v9, %v248_v8  ;;  %v264_v15 = vrot.slane %v238_v9, %v263_v10  ;;  %v274_v16 = vrot.slane %v238_v9, %v273_v11  ;;  %v284_v24 = vrot.slane %v238_v9, %v283_v17  ;;  %v287_v29 = vld [vmem:[%s233_s24] sm:$0xff]  ;;  %p471_p0 = pneg %p470_p13  ;;  %s472_s10 = sshll.u32 %s552_s18, 4  ;;  %s473_s10 = int_to_ptr.vmem [resolvable:$false] %s472_s10 }
  0x1c   : > { %s474_s11 = scalar_lea.vmem %s473_s10, 256  ;;  %p475_p1 = scmp.lt.s32.totalorder %s654_s30, %s473_s10 }
  0x1d   : > { %p476_p2 = scmp.lt.s32.totalorder %s474_s11, %s468_s9 }
  0x1f   : > { %p477_p3 = por %p476_p2, %p475_p1 }
  0x21   : > { %p478_p5 = pnand %p477_p3, %p471_p0 }
  0x8f   : > { %v244_v13 = vpop.permute.xlu0 %243  ;;  %v259_v14 = vpop.permute.xlu1 %258 }
  0x90   : > { %v250_v18 = vmul.f32 %v249_v12, %v244_v13  ;;  %v265_v20 = vmul.f32 %v264_v15, %v259_v14 }
  0x93   : > { %v254_v19 = vpop.permute.xlu0 %253 }
  0x94   : > { %v256_v21 = vadd.f32 %v254_v19, %v250_v18  ;;  %v269_v22 = vpop.permute.xlu1 %268 }
  0x95   : > { %v275_v23 = vmul.f32 %v274_v16, %v269_v22 }
  0x96   : > { %v266_v25 = vadd.f32 %v265_v20, %v256_v21 }
  0x98   : > { %v276_v26 = vadd.f32 %v275_v23, %v266_v25  ;;  %v279_v27 = vpop.permute.xlu0 %278 }
  0x99   : > { %v285_v28 = vmul.f32 %v284_v24, %v279_v27 }
  0x9b   : > { %v286_v30 = vadd.f32 %v285_v28, %v276_v26 }
  0x9d   : > { %v288_v31 = vadd.f32 %v287_v29, %v286_v30 }
  0x9f   : > { %289 = vst [vmem:[%s225_s29] sm:$0xff] %v288_v31 }
  0xa0   : > { %481 = shalt.err (!%p478_p5)
}
  0xa1   : > { %s482_s12 = scalar_lea.hbm %s652_s7, 128  ;;  %s486_s21 = scalar_lea.hbm %s703_s4, 256 }
  0xa2   : > { %p483_p6 = scmp.ne.s32.totalorder %s652_s7, %s482_s12  ;;  %p487_p10 = scmp.lt.u32.totalorder %s652_s7, %s703_s4 }
  0xa3   : > { %p488_p11 = scmp.lt.u32.totalorder %s486_s21, %s482_s12  ;;  %p490_p13 = scmp.lt.u32.totalorder %s482_s12, %s652_s7 }
  0xa4   : > { %p484_p7 = pnand %p483_p6, %p618_p4 }
  0xa5   : > { %p489_p12 = por %p488_p11, %p487_p10 }
  0xa6   : > { %p485_p9 = pneg %p484_p7 }
  0xa7   : > { %p491_p0 = por %p490_p13, %p489_p12 }
  0xa9   : > { %p492_p1 = pnand %p491_p0, %p485_p9 }
  0xab   : > { %495 = shalt.err (!%p492_p1)
}
  0xac   : > { %405 = dma.vmem_to_hbm [thread:$0]  (%p618_p4), %s654_s30, 128, %s652_s7, %s291_s8  }
  0xad PF: > { %p411_p2 = scmp.ge.s32.totalorder %s546_s20, 2  ;;  %s318_s26 = sand.u32 1, %s526_s15  }
  0xae   : > { %s319_s29 = scalar_lea.sflag [#allocation3], %s318_s26 }
  0xaf   : > { %p408_p3 = pnand %p411_p2, %p625_p8 }
  0xb1   : > { %521 = dma.done.wait (!%p408_p3), %s319_s29, 128  }
  0xb2   : > { %523 = vsyncadd (!%p408_p3), %s319_s29, 4294967168  ;;  %s17_s20 = sadd.s32 1, %s546_s20   ;;  %s706_s15 = smov %s530_s16 }
  0xb3   : > { %p14_p5 = scmp.ge.s32.totalorder %s17_s20, 4   ;;  %s707_s16 = smov %s534_s17 }
  0xb4   : > { %s708_s17 = smov %s631_s28  ;;  %s709_s18 = smov %s542_s19 }
  0xb5   : > { %s710_s19 = smov %s712_s23  ;;  %16 = sbr.rel (!%p14_p5) target bundleno = 4 (0x4), region = 74 }
  0xbc   :  { %324 = vsyncpa [#allocation3], 1 }
  0xbd   :  { %326 = vsyncpa [#allocation3 + $0x1], 1 }

</bundles_post_ra>
